<compile_context>
chip_gen: v5e
topology: v5e:2x2
jax: 0.10.0
libtpu: 0.0.40
codegen_flags: <defaults>
</compile_context>

<pallas_src>
import functools
import math

import jax
import jax.numpy as jnp
from jax import lax
from jax.experimental import pallas as pl
from jax.experimental.pallas import tpu as pltpu


def _relative_position_kernel(table_ref, out_ref, *, max_rel):
    # table_ref: (V, D) with V = 2*max_rel + 1 (resident across the grid)
    # out_ref:   (q_tile, Lk, D) block for queries [q0, q0 + q_tile)
    q_tile, length_k, _ = out_ref.shape
    v_size = table_ref.shape[0]
    q0 = pl.program_id(0) * q_tile

    table = table_ref[...]                                           # (V, D)
    # Hoisted iotas (reused by every unrolled q step).
    k_col = lax.broadcasted_iota(jnp.int32, (length_k, 1), 0)        # (Lk, 1)
    v_row = lax.broadcasted_iota(jnp.int32, (length_k, v_size), 1)   # (Lk, V)

    for i in range(q_tile):            # static unroll; i*Lk offsets are static
        q = q0 + i                     # traced scalar
        idx = jnp.clip(k_col - q, -max_rel, max_rel) + max_rel       # (Lk, 1)
        onehot = (v_row == idx).astype(table.dtype)                  # (Lk, V)
        # Gather-as-matmul: out[q0+i, k, :] = table[idx[k], :]
        out_ref[i] = jnp.dot(onehot, table,
                             preferred_element_type=jnp.float32
                             ).astype(out_ref.dtype)


def relative_position(embeddings_table, length_q, length_k,
                      max_relative_position, *, q_tile=None):
    """Pallas equivalent of RelativePosition.forward(length_q, length_k)."""
    v_size, num_units = embeddings_table.shape
    assert v_size == 2 * max_relative_position + 1

    if q_tile is None:
        q_tile = min(length_q, 8)
    while length_q % q_tile:           # pick a tile that divides length_q
        q_tile -= 1
    grid = (length_q // q_tile,)

    kernel = functools.partial(_relative_position_kernel,
                               max_rel=max_relative_position)

    return pl.pallas_call(
        kernel,
        out_shape=jax.ShapeDtypeStruct((length_q, length_k, num_units),
                                       embeddings_table.dtype),
        grid_spec=pltpu.PrefetchScalarGridSpec(
            num_scalar_prefetch=0,
            grid=grid,
            in_specs=[
                # Full table, resident across all grid steps.
                pl.BlockSpec((v_size, num_units), lambda i: (0, 0)),
            ],
            out_specs=pl.BlockSpec((q_tile, length_k, num_units),
                                   lambda i: (i, 0, 0)),
        ),
        compiler_params=pltpu.CompilerParams(
            dimension_semantics=("parallel",),
        ),
    )(embeddings_table)


def reference_forward(embeddings_table, length_q, length_k,
                      max_relative_position):
    """Pure-JAX mirror of the PyTorch forward."""
    range_q = jnp.arange(length_q)
    range_k = jnp.arange(length_k)
    distance = range_k[None, :] - range_q[:, None]
    clipped = jnp.clip(distance, -max_relative_position, max_relative_position)
    final = clipped + max_relative_position
    return embeddings_table[final]


if __name__ == "__main__":
    # Small shapes consistent with the module: num_units=32 (per-head dim),
    # max_relative_position=4 (V=9), sequence length 8 for both q and k.
    num_units = 32
    max_relative_position = 4
    length_q, length_k = 8, 8
    v_size = 2 * max_relative_position + 1

    key = jax.random.PRNGKey(0)
    # Deterministic xavier-uniform-style init of the embeddings table.
    limit = math.sqrt(6.0 / (v_size + num_units))
    embeddings_table = jax.random.uniform(
        key, (v_size, num_units), jnp.float32, minval=-limit, maxval=limit)

    out = relative_position(embeddings_table, length_q, length_k,
                            max_relative_position, q_tile=4)   # grid of 2 steps
    out = jax.block_until_ready(out)

    ref = jax.block_until_ready(
        reference_forward(embeddings_table, length_q, length_k,
                          max_relative_position))

    assert out.shape == (length_q, length_k, num_units)
    err = jnp.max(jnp.abs(out - ref))
    assert jnp.allclose(out, ref, atol=1e-6, rtol=1e-6), f"max abs diff {err}"

    print("KERNEL_OK")
</pallas_src>

<mosaic_0001>
module attributes {stable_mosaic.version = 11 : i64} {
  func.func @_relative_position_kernel(%arg0: i32, %arg1: memref<9x32xf32, #tpu.memory_space<vmem>>, %arg2: memref<4x8x32xf32, #tpu.memory_space<vmem>>) attributes {dimension_semantics = [#tpu.dimension_semantics<parallel>], iteration_bounds = array<i64: 2>, scalar_prefetch = 0 : i64, scratch_operands = 0 : i64, tpu.core_type = #tpu.core_type<tc>, window_params = [{pipeline_mode = #tpu.pipeline_mode<synchronous>, transform_indices = @transform_0, window_bounds = array<i64: 9, 32>}, {transform_indices = @transform_1, window_bounds = array<i64: 4, 8, 32>}]} {
    %c4_i32 = arith.constant 4 : i32
    %0 = arith.muli %arg0, %c4_i32 : i32
    %c0 = arith.constant 0 : index
    %c0_0 = arith.constant 0 : index
    %1 = vector.load %arg1[%c0, %c0_0] : memref<9x32xf32, #tpu.memory_space<vmem>>, vector<9x32xf32>
    %2 = tpu.iota {dimensions = array<i32: 0>} : vector<8x1xi32>
    %3 = tpu.iota {dimensions = array<i32: 1>} : vector<8x9xi32>
    %c0_i32 = arith.constant 0 : i32
    %4 = arith.addi %0, %c0_i32 : i32
    %5 = vector.broadcast %4 : i32 to vector<8x1xi32>
    %6 = arith.subi %2, %5 : vector<8x1xi32>
    %c-4_i32 = arith.constant -4 : i32
    %c4_i32_1 = arith.constant 4 : i32
    %7 = vector.broadcast %c-4_i32 : i32 to vector<8x1xi32>
    %8 = arith.maxsi %7, %6 : vector<8x1xi32>
    %9 = vector.broadcast %c4_i32_1 : i32 to vector<8x1xi32>
    %10 = arith.minsi %9, %8 : vector<8x1xi32>
    %c4_i32_2 = arith.constant 4 : i32
    %11 = vector.broadcast %c4_i32_2 : i32 to vector<8x1xi32>
    %12 = arith.addi %10, %11 : vector<8x1xi32>
    %13 = vector.broadcast %12 : vector<8x1xi32> to vector<8x9xi32>
    %14 = arith.cmpi eq, %3, %13 : vector<8x9xi32>
    %15 = arith.extui %14 : vector<8x9xi1> to vector<8x9xi32>
    %16 = arith.sitofp %15 : vector<8x9xi32> to vector<8x9xf32>
    %cst = arith.constant dense<0.000000e+00> : vector<8x32xf32>
    %17 = tpu.matmul %16, %1, %cst {dimension_numbers = #tpu.dot_dimension_numbers<[1], [0], [0], [1], [0, 0, 1, 1], [], []>} : vector<8x9xf32>, vector<9x32xf32>, vector<8x32xf32> -> vector<8x32xf32>
    %c0_3 = arith.constant 0 : index
    %c0_4 = arith.constant 0 : index
    %c0_5 = arith.constant 0 : index
    %18 = vector.load %arg2[%c0_3, %c0_4, %c0_5] : memref<4x8x32xf32, #tpu.memory_space<vmem>>, vector<1x8x32xf32>
    %19 = vector.shape_cast %18 : vector<1x8x32xf32> to vector<8x32xf32>
    %20 = vector.shape_cast %17 : vector<8x32xf32> to vector<1x8x32xf32>
    tpu.vector_store %arg2[%c0_3, %c0_4, %c0_5], %20 {strides = array<i32>} : memref<4x8x32xf32, #tpu.memory_space<vmem>>, vector<1x8x32xf32>,
    %c1_i32 = arith.constant 1 : i32
    %21 = arith.addi %0, %c1_i32 : i32
    %22 = vector.broadcast %21 : i32 to vector<8x1xi32>
    %23 = arith.subi %2, %22 : vector<8x1xi32>
    %c-4_i32_6 = arith.constant -4 : i32
    %c4_i32_7 = arith.constant 4 : i32
    %24 = vector.broadcast %c-4_i32_6 : i32 to vector<8x1xi32>
    %25 = arith.maxsi %24, %23 : vector<8x1xi32>
    %26 = vector.broadcast %c4_i32_7 : i32 to vector<8x1xi32>
    %27 = arith.minsi %26, %25 : vector<8x1xi32>
    %c4_i32_8 = arith.constant 4 : i32
    %28 = vector.broadcast %c4_i32_8 : i32 to vector<8x1xi32>
    %29 = arith.addi %27, %28 : vector<8x1xi32>
    %30 = vector.broadcast %29 : vector<8x1xi32> to vector<8x9xi32>
    %31 = arith.cmpi eq, %3, %30 : vector<8x9xi32>
    %32 = arith.extui %31 : vector<8x9xi1> to vector<8x9xi32>
    %33 = arith.sitofp %32 : vector<8x9xi32> to vector<8x9xf32>
    %cst_9 = arith.constant dense<0.000000e+00> : vector<8x32xf32>
    %34 = tpu.matmul %33, %1, %cst_9 {dimension_numbers = #tpu.dot_dimension_numbers<[1], [0], [0], [1], [0, 0, 1, 1], [], []>} : vector<8x9xf32>, vector<9x32xf32>, vector<8x32xf32> -> vector<8x32xf32>
    %c1 = arith.constant 1 : index
    %c0_10 = arith.constant 0 : index
    %c0_11 = arith.constant 0 : index
    %35 = vector.load %arg2[%c1, %c0_10, %c0_11] : memref<4x8x32xf32, #tpu.memory_space<vmem>>, vector<1x8x32xf32>
    %36 = vector.shape_cast %35 : vector<1x8x32xf32> to vector<8x32xf32>
    %37 = vector.shape_cast %34 : vector<8x32xf32> to vector<1x8x32xf32>
    tpu.vector_store %arg2[%c1, %c0_10, %c0_11], %37 {strides = array<i32>} : memref<4x8x32xf32, #tpu.memory_space<vmem>>, vector<1x8x32xf32>,
    %c2_i32 = arith.constant 2 : i32
    %38 = arith.addi %0, %c2_i32 : i32
    %39 = vector.broadcast %38 : i32 to vector<8x1xi32>
    %40 = arith.subi %2, %39 : vector<8x1xi32>
    %c-4_i32_12 = arith.constant -4 : i32
    %c4_i32_13 = arith.constant 4 : i32
    %41 = vector.broadcast %c-4_i32_12 : i32 to vector<8x1xi32>
    %42 = arith.maxsi %41, %40 : vector<8x1xi32>
    %43 = vector.broadcast %c4_i32_13 : i32 to vector<8x1xi32>
    %44 = arith.minsi %43, %42 : vector<8x1xi32>
    %c4_i32_14 = arith.constant 4 : i32
    %45 = vector.broadcast %c4_i32_14 : i32 to vector<8x1xi32>
    %46 = arith.addi %44, %45 : vector<8x1xi32>
    %47 = vector.broadcast %46 : vector<8x1xi32> to vector<8x9xi32>
    %48 = arith.cmpi eq, %3, %47 : vector<8x9xi32>
    %49 = arith.extui %48 : vector<8x9xi1> to vector<8x9xi32>
    %50 = arith.sitofp %49 : vector<8x9xi32> to vector<8x9xf32>
    %cst_15 = arith.constant dense<0.000000e+00> : vector<8x32xf32>
    %51 = tpu.matmul %50, %1, %cst_15 {dimension_numbers = #tpu.dot_dimension_numbers<[1], [0], [0], [1], [0, 0, 1, 1], [], []>} : vector<8x9xf32>, vector<9x32xf32>, vector<8x32xf32> -> vector<8x32xf32>
    %c2 = arith.constant 2 : index
    %c0_16 = arith.constant 0 : index
    %c0_17 = arith.constant 0 : index
    %52 = vector.load %arg2[%c2, %c0_16, %c0_17] : memref<4x8x32xf32, #tpu.memory_space<vmem>>, vector<1x8x32xf32>
    %53 = vector.shape_cast %52 : vector<1x8x32xf32> to vector<8x32xf32>
    %54 = vector.shape_cast %51 : vector<8x32xf32> to vector<1x8x32xf32>
    tpu.vector_store %arg2[%c2, %c0_16, %c0_17], %54 {strides = array<i32>} : memref<4x8x32xf32, #tpu.memory_space<vmem>>, vector<1x8x32xf32>,
    %c3_i32 = arith.constant 3 : i32
    %55 = arith.addi %0, %c3_i32 : i32
    %56 = vector.broadcast %55 : i32 to vector<8x1xi32>
    %57 = arith.subi %2, %56 : vector<8x1xi32>
    %c-4_i32_18 = arith.constant -4 : i32
    %c4_i32_19 = arith.constant 4 : i32
    %58 = vector.broadcast %c-4_i32_18 : i32 to vector<8x1xi32>
    %59 = arith.maxsi %58, %57 : vector<8x1xi32>
    %60 = vector.broadcast %c4_i32_19 : i32 to vector<8x1xi32>
    %61 = arith.minsi %60, %59 : vector<8x1xi32>
    %c4_i32_20 = arith.constant 4 : i32
    %62 = vector.broadcast %c4_i32_20 : i32 to vector<8x1xi32>
    %63 = arith.addi %61, %62 : vector<8x1xi32>
    %64 = vector.broadcast %63 : vector<8x1xi32> to vector<8x9xi32>
    %65 = arith.cmpi eq, %3, %64 : vector<8x9xi32>
    %66 = arith.extui %65 : vector<8x9xi1> to vector<8x9xi32>
    %67 = arith.sitofp %66 : vector<8x9xi32> to vector<8x9xf32>
    %cst_21 = arith.constant dense<0.000000e+00> : vector<8x32xf32>
    %68 = tpu.matmul %67, %1, %cst_21 {dimension_numbers = #tpu.dot_dimension_numbers<[1], [0], [0], [1], [0, 0, 1, 1], [], []>} : vector<8x9xf32>, vector<9x32xf32>, vector<8x32xf32> -> vector<8x32xf32>
    %c3 = arith.constant 3 : index
    %c0_22 = arith.constant 0 : index
    %c0_23 = arith.constant 0 : index
    %69 = vector.load %arg2[%c3, %c0_22, %c0_23] : memref<4x8x32xf32, #tpu.memory_space<vmem>>, vector<1x8x32xf32>
    %70 = vector.shape_cast %69 : vector<1x8x32xf32> to vector<8x32xf32>
    %71 = vector.shape_cast %68 : vector<8x32xf32> to vector<1x8x32xf32>
    tpu.vector_store %arg2[%c3, %c0_22, %c0_23], %71 {strides = array<i32>} : memref<4x8x32xf32, #tpu.memory_space<vmem>>, vector<1x8x32xf32>,
    return
  }
  func.func @transform_0(%arg0: i32) -> (i32, i32) {
    %c0_i32 = arith.constant 0 : i32
    %c0_i32_0 = arith.constant 0 : i32
    %c0_i32_1 = arith.constant 0 : i32
    return %c0_i32, %c0_i32_0 : i32, i32
  }
  func.func @transform_1(%arg0: i32) -> (i32, i32, i32) {
    %c0_i32 = arith.constant 0 : i32
    %c0_i32_0 = arith.constant 0 : i32
    %c0_i32_1 = arith.constant 0 : i32
    return %arg0, %c0_i32, %c0_i32_0 : i32, i32, i32
  }
}

</mosaic_0001>

<bundles_post_ra>
// kernel: tpu_custom_call.1
= control target key start
LH: loop header
LB: loop body
LE: loop exit
PB: predicated region body
PF: predicated region fallthrough
CT: control target
= control target key end

     0   :  { %6 = vsyncpa [#allocation3], 0  ;;  %s642_s0 = inlined_call_operand.hbm [shape: f32[9,32], index: 0, kind: input, shape index: {}]   ;;  %s643_s1 = inlined_call_operand.hbm [shape: f32[8,8,32], index: 1, kind: output, shape index: {}]  }
   0x1   :  { %7 = vsyncpa [#allocation4], 0 }
   0x2   :  { %9 = vsyncpa [#allocation4 + $0x1], 0  ;;  %s543_s6 = smov 0   ;;  %s545_s7 = smov 0  }
   0x3   :  { %s547_s8 = smov 0   ;;  %s549_s9 = smov 0  }
   0x4 LB: > { %s564_s10 = sadd.s32 4294967295, %s525_s9   ;;  %s346_s11 = sadd.s32 4294967294, %s525_s9   ;;  %s525_s9 = sphi %s549_s9, %s649_s9   ;;  %s521_s8 = sphi %s547_s8, %s648_s8   ;;  %s517_s7 = sphi %s545_s7, %s647_s7   ;;  %s513_s6 = sphi %s543_s6, %s646_s6  }
   0x5   : > { %s568_s12 = sadd.s32 1, %s525_s9   ;;  %s43_s13 = sadd.s32 1, %s521_s8 }
   0x6   : > { %s40_s14 = ssub.s32 %s525_s9, %s568_s12  ;;  %p53_p0 = scmp.ne.s32.totalorder %s521_s8, %s517_s7 }
   0x7   : > { %p41_p1 = scmp.eq.s32.totalorder %s40_s14, 0  ;;  %p54_p2 = scmp.eq.s32.totalorder %s564_s10, 1 }
   0x8   : > { %p59_p3 = scmp.ne.s32.totalorder %s517_s7, %s513_s6  ;;  %p60_p4 = scmp.eq.s32.totalorder %s346_s11, 1 }
   0x9   : > { %s579_s15 = scalar_select %p41_p1, %s521_s8, %s43_s13  }
   0xa   : > { %p581_p5 = por %p54_p2, %p53_p0  ;;  %p585_p6 = por %p60_p4, %p59_p3 }
   0xb   : > { %p347_p7 = scmp.ge.s32.totalorder %s525_s9, 1  ;;  %p67_p8 = scmp.lt.s32.totalorder %s525_s9, 3 }
   0xc   : > { %p388_p9 = scmp.eq.s32.totalorder %s564_s10, 0  ;;  %s78_s20 = sshll.u32 %s642_s0, 4  ;;  %s79_s20 = int_to_ptr.hbm [resolvable:$true] %s78_s20 }
   0xd   : > { %p68_p10 = pnand %p347_p7, %p67_p8  ;;  %s527_s21 = smov [#allocation2]  }
   0xe   : > { %s80_s22 = sshll.u32 %s527_s21, 4  ;;  %s528_s23 = smov 128   ;;  %s81_s22 = int_to_ptr.vmem [resolvable:$true] %s80_s22 }
   0xf   : > { %p380_p11 = pneg %p68_p10  ;;  %s529_s24 = smov 8  }
  0x10   : > { %96 = sbr.rel (%p68_p10) target bundleno = 173 (0xad), region = 24 }
  0x11   : > { %p381_p12 = pnand %p388_p9, %p380_p11 }
  0x13   : > { %383 = dma.hbm_to_vmem [thread:$0]  (!%p381_p12), %s79_s20, 256, %s81_s22, [#allocation3], %s528_s23, %s528_s23, %s529_s24  }
  0x15   : > { %504 = dma.done.wait (%p388_p9), [#allocation3], 256  }
  0x16   : > { %506 = vsyncadd (%p388_p9), [#allocation3], 4294967040  ;;  %s352_s25 = sshll.u32 %s564_s10, 2  ;;  %v116_v0 = vlaneseq  ;;  %vm134_vm0 = vcmask 1040384   ;;  %v115_v11 = vld [vmem:[#allocation2 + $0x8] sm:$0x1] }
  0x17   : > { %s196_s26 = sadd.s32 2, %s352_s25  ;;  %s232_s27 = sadd.s32 3, %s352_s25  ;;  %v120_v1 = vstv %s352_s25  ;;  %v114_v12 = vld [vmem:[#allocation2] sm:$0xff]  ;;  %361 = vmatpush.msk.msra.mxu2 %vm134_vm0, %v115_v11  ;;  %365 = vmatpush.msk.msra.mxu3 %vm134_vm0, %v115_v11  ;;  %vm130_vm9 = vcmask 72704   ;;  %v530_v25 = vmov 0.0   ;;  %vm158_vm14 = vcmask 261120  }
  0x18   : > { %v117_v2 = vshrl.u32 %v116_v0, 7  ;;  %v197_v3 = vstv %s196_s26  ;;  %v233_v4 = vstv %s232_s27  ;;  %s160_s28 = sadd.s32 1, %s352_s25  ;;  %v119_v10 = vand.u32 127, %v116_v0  ;;  %354 = vmatpush.msk.msra.mxu0 %vm134_vm0, %v115_v11  ;;  %357 = vmatpush.msk.msra.mxu1 %vm134_vm0, %v115_v11  ;;  %s109_s29 = sand.u32 1, %s517_s7  }
  0x19   : > { %v161_v5 = vstv %s160_s28  ;;  %225 = vmatpush.msra.mxu2 %v114_v12  ;;  %261 = vmatpush.msra.mxu3 %v114_v12  ;;  %s351_s30 = sshll.u32 %s109_s29, 5  ;;  %s373_s2 = sshll.u32 %s564_s10, 5 }
  0x1a   : > { %v198_v6 = vsub.s32 %v117_v2, %v197_v3  ;;  %v234_v7 = vsub.s32 %v117_v2, %v233_v4  ;;  %v121_v8 = vsub.s32 %v117_v2, %v120_v1  ;;  %v162_v9 = vsub.s32 %v117_v2, %v161_v5  ;;  %153 = vmatpush.msra.mxu0 %v114_v12  ;;  %s280_s5 = scalar_lea.hbm %s643_s1, %s373_s2  ;;  %s111_s11 = scalar_lea.vmem [#allocation5], %s351_s30 }
  0x1b   : > { %189 = vmatpush.msra.mxu1 %v114_v12  ;;  %s281_s13 = sshll.u32 %s111_s11, 4  ;;  %s283_s14 = sshll.u32 %s280_s5, 4  ;;  %s282_s13 = int_to_ptr.vmem [resolvable:$true] %s281_s13  ;;  %s284_s14 = int_to_ptr.hbm [resolvable:$true] %s283_s14 }
  0x1c   : > { %vm199_vm1 = vcmp.gt.s32.totalorder %v198_v6, 4294967292  ;;  %vm235_vm2 = vcmp.gt.s32.totalorder %v234_v7, 4294967292  ;;  %vm122_vm3 = vcmp.gt.s32.totalorder %v121_v8, 4294967292  ;;  %vm163_vm4 = vcmp.gt.s32.totalorder %v162_v9, 4294967292  ;;  %s269_s10 = scalar_lea.sflag [#allocation4], %s109_s29  ;;  %s473_s18 = sshra.s32 %s284_s14, 4  ;;  %s474_s18 = int_to_ptr.hbm [resolvable:$true] %s473_s18 }
  0x1d   : > { %v200_v13 = vsel %vm199_vm1, %v198_v6, 4294967292  ;;  %v236_v14 = vsel %vm235_vm2, %v234_v7, 4294967292  ;;  %v123_v15 = vsel %vm122_vm3, %v121_v8, 4294967292  ;;  %v164_v16 = vsel %vm163_vm4, %v162_v9, 4294967292  ;;  %s475_s19 = scalar_lea.hbm %s474_s18, 32  ;;  %s479_s22 = scalar_lea.hbm %s643_s1, 64 }
  0x1e   : > { %vm201_vm5 = vcmp.lt.s32.totalorder %v200_v13, 4  ;;  %vm237_vm6 = vcmp.lt.s32.totalorder %v236_v14, 4  ;;  %vm124_vm7 = vcmp.lt.s32.totalorder %v123_v15, 4  ;;  %vm165_vm8 = vcmp.lt.s32.totalorder %v164_v16, 4  ;;  %p476_p13 = scmp.ne.s32.totalorder %s474_s18, %s475_s19  ;;  %p480_p2 = scmp.lt.s32.totalorder %s474_s18, %s643_s1 }
  0x1f   : > { %v202_v17 = vsel %vm201_vm5, %v200_v13, 4  ;;  %v238_v18 = vsel %vm237_vm6, %v236_v14, 4  ;;  %v125_v19 = vsel %vm124_vm7, %v123_v15, 4  ;;  %v166_v23 = vsel %vm165_vm8, %v164_v16, 4  ;;  %p481_p3 = scmp.lt.s32.totalorder %s479_s22, %s475_s19 }
  0x20   : > { %v203_v20 = vadd.s32 4, %v202_v17  ;;  %v239_v21 = vadd.s32 4, %v238_v18  ;;  %v126_v22 = vadd.s32 4, %v125_v19  ;;  %v167_v24 = vadd.s32 4, %v166_v23  ;;  %p477_p0 = pnand %p476_p13, %p581_p5 }
  0x21   : > { %p482_p4 = por %p481_p3, %p480_p2 }
  0x22   : > { %vm204_vm10 = vcmp.eq.s32.totalorder %v119_v10, %v203_v20  ;;  %vm240_vm11 = vcmp.eq.s32.totalorder %v119_v10, %v239_v21  ;;  %vm127_vm12 = vcmp.eq.s32.totalorder %v119_v10, %v126_v22  ;;  %vm168_vm13 = vcmp.eq.s32.totalorder %v119_v10, %v167_v24  ;;  %p478_p1 = pneg %p477_p0 }
  0x23   : > { %v360_v26 = vsel %vm204_vm10, 1.0, %v530_v25  ;;  %v364_v27 = vsel %vm240_vm11, 1.0, %v530_v25  ;;  %v353_v28 = vsel %vm127_vm12, 1.0, %v530_v25  ;;  %v356_v29 = vsel %vm168_vm13, 1.0, %v530_v25 }
  0x24   : > { %362 = vmatmul.msk.f32.vlgmr.msra.gmra.mxu2 %vm130_vm9, %v360_v26  ;;  %366 = vmatmul.msk.f32.vlgmr.msra.gmra.mxu3 %vm130_vm9, %v364_v27  ;;  %p483_p7 = pnand %p482_p4, %p478_p1 }
  0x25   : > { %355 = vmatmul.msk.f32.vlgmr.msra.gmra.mxu0 %vm130_vm9, %v353_v28  ;;  %358 = vmatmul.msk.f32.vlgmr.msra.gmra.mxu1 %vm130_vm9, %v356_v29 }
  0xa2   : > { %v155_v30 = vpop.f32.mrf.mxu0  ;;  %v191_v31 = vpop.f32.mrf.mxu1 }
  0xa3   : > { %159 = vst.msk [vmem:[%s111_s11] sm:$0xff] %vm158_vm14, %v155_v30 }
  0xa4   : > { %359 = vst.msk [vmem:[%s111_s11 + $0x8] sm:$0xff] %vm158_vm14, %v191_v31 }
  0xa7   : > { %v227_v32 = vpop.f32.mrf.mxu2  ;;  %v263_v33 = vpop.f32.mrf.mxu3 }
  0xa8   : > { %363 = vst.msk [vmem:[%s111_s11 + $0x10] sm:$0xff] %vm158_vm14, %v227_v32 }
  0xa9   : > { %367 = vst.msk [vmem:[%s111_s11 + $0x18] sm:$0xff] %vm158_vm14, %v263_v33 }
  0xaa   : > { %486 = shalt.err (!%p483_p7)
}
  0xab   : > { %s531_s25 = smov 128   ;;  %s532_s26 = smov 8  }
  0xac   : > { %378 = dma.vmem_to_hbm [thread:$0]  (%p581_p5), %s282_s13, 512, %s284_s14, %s269_s10, %s531_s25, %s531_s25, %s532_s26  }
  0xad PF: > { %p390_p8 = scmp.ge.s32.totalorder %s525_s9, 2  ;;  %s298_s27 = sand.u32 1, %s513_s6  }
  0xae   : > { %s299_s28 = scalar_lea.sflag [#allocation4], %s298_s27 }
  0xaf   : > { %p385_p9 = pnand %p390_p8, %p585_p6 }
  0xb1   : > { %p386_p10 = pneg %p385_p9 }
  0xb3   : > { %508 = dma.done.wait (%p386_p10), %s299_s28, 512  }
  0xb4   : > { %510 = vsyncadd (%p386_p10), %s299_s28, 4294966784  ;;  %p12_p11 = scmp.ge.s32.totalorder %s568_s12, 4   ;;  %s646_s6 = smov %s517_s7 }
  0xb5   : > { %s647_s7 = smov %s521_s8  ;;  %s648_s8 = smov %s579_s15 }
  0xb6   : > { %s649_s9 = smov %s568_s12  ;;  %14 = sbr.rel (!%p12_p11) target bundleno = 4 (0x4), region = 64 }
  0xbb   :  { %305 = vsyncpa [#allocation3], 1 }
  0xbc   :  { %307 = vsyncpa [#allocation3 + $0x1], 1 }
  0xbd   :  { %308 = vsyncpa [#allocation4], 1 }
  0xbe   :  { %310 = vsyncpa [#allocation4 + $0x1], 1 }

</bundles_post_ra>
